<compile_context>
chip_gen: v6e
topology: v6e:2x2x1
jax: 0.10.0
libtpu: 0.0.40
codegen_flags: <defaults>
</compile_context>

<pallas_src>
import jax
import jax.numpy as jnp
from jax import lax
from jax.experimental import pallas as pl
from jax.experimental.pallas import tpu as pltpu

LANE = 128        # vreg lane width (last dim)
SUBLANE = 8       # vreg sublane width (second-to-last dim)
_NEG_BIG = -1e30  # stand-in for -inf when masking padded logit lanes


def _round_up(v, m):
    return ((v + m - 1) // m) * m


# ---------------------------------------------------------------------------
# Fused Pallas kernel: [Linear->ReLU] * n_blocks -> Linear -> log_softmax
# ---------------------------------------------------------------------------
def make_fused_fcnet_kernel(n_blocks, out_channels):
    """Build a fused kernel for a fixed number of hidden blocks.

    Ref order: x_ref, (w0, b0, w1, b1, ..., w_last, b_last), o_ref.
    Weights arrive pre-padded (lane multiples of 128) in bf16; biases are
    padded f32.  Padded weight rows/cols and bias lanes are zero, so hidden
    activations stay exact; only the final logits need masking before the
    softmax normalization.
    """

    def kernel(*refs):
        x_ref = refs[0]
        o_ref = refs[-1]
        p = refs[1:-1]

        h = x_ref[...]  # f32 activations
        # Hidden blocks: Linear -> ReLU; intermediates stay in vregs/VMEM.
        for i in range(n_blocks):
            w = p[2 * i][...]          # bf16 resident weight
            b = p[2 * i + 1][...]      # f32 bias
            acc = jnp.dot(h.astype(jnp.bfloat16), w,
                          preferred_element_type=jnp.float32)
            h = jnp.maximum(acc + b, 0.0)

        # Final Linear (bf16 operands, f32 accumulation).
        w = p[2 * n_blocks][...]
        b = p[2 * n_blocks + 1][...]
        y = jnp.dot(h.astype(jnp.bfloat16), w,
                    preferred_element_type=jnp.float32) + b

        # Mask padded logit lanes so they do not leak into max / sum.
        lane_ids = lax.broadcasted_iota(jnp.int32, y.shape, 1)
        y = jnp.where(lane_ids < out_channels, y, _NEG_BIG)

        # log_softmax over the last axis, all in f32.
        m = jnp.max(y, axis=-1, keepdims=True)
        shifted = y - m
        lse = jnp.log(jnp.sum(jnp.exp(shifted), axis=-1, keepdims=True))
        o_ref[...] = shifted - lse

    return kernel


# ---------------------------------------------------------------------------
# One-time parameter preparation (pad + cast ONCE, not per forward call)
# ---------------------------------------------------------------------------
def prepare_fcnet_params(params):
    """Pad feature dims to multiples of 128 and cast weights to bf16, once."""
    blocks = params["blocks"]
    w_last, b_last = params["last"]
    layers = list(blocks) + [(w_last, b_last)]

    flat, dims = [], []
    for w, b in layers:
        ip, op = w.shape
        ipp, opp = _round_up(ip, LANE), _round_up(op, LANE)
        w_p = jnp.pad(w, ((0, ipp - ip), (0, opp - op))).astype(jnp.bfloat16)
        b_p = jnp.pad(b, ((0, 0), (0, opp - op))).astype(jnp.float32)
        flat += [w_p, b_p]
        dims.append((ipp, opp))

    return {
        "flat": [jax.device_put(a) for a in flat],
        "dims": dims,
        "n_blocks": len(blocks),
        "feature_channel": layers[0][0].shape[0],
        "output_channel": w_last.shape[1],
    }


# ---------------------------------------------------------------------------
# Tile sizing from an explicit VMEM budget (fits v7x's 64 MiB per TC)
# ---------------------------------------------------------------------------
def _pick_tile_n(n, f_pad, out_pad, dims, vmem_budget_bytes, max_tile_n):
    n_pad8 = _round_up(n, SUBLANE)
    # Resident (single-buffered) bf16 weights + f32 biases.
    resident = sum(ipp * opp * 2 + opp * 4 for ipp, opp in dims)
    widest = max(opp for _, opp in dims)
    # Per activation row: double-buffered f32 x tile, double-buffered f32 out
    # tile, plus slack for the widest live f32 intermediate activation.
    per_row = (2 * f_pad + 2 * out_pad + 2 * widest) * 4
    avail = max(vmem_budget_bytes - resident, SUBLANE * per_row)
    tile_n = max(SUBLANE, (avail // per_row) // SUBLANE * SUBLANE)
    tile_n = int(min(tile_n, max_tile_n, n_pad8))
    # v7x megacore: the "parallel" grid axis only shards across the 2 TCs if
    # there are >= 2 grid steps; split large-but-single-tile batches in two.
    if n_pad8 >= 2 * 256 and n_pad8 <= tile_n:
        tile_n = _round_up((n_pad8 + 1) // 2, SUBLANE)
    return tile_n


def _build_in_specs(tile_n, f_pad, dims, use_buffered):
    specs = [pl.BlockSpec((tile_n, f_pad), lambda i: (i, 0))]
    for (ipp, opp) in dims:
        if use_buffered:
            # Block index never changes -> single-buffer the resident params.
            specs.append(pl.BlockSpec((ipp, opp), lambda i: (0, 0),
                                      pipeline_mode=pl.Buffered(1)))
            specs.append(pl.BlockSpec((1, opp), lambda i: (0, 0),
                                      pipeline_mode=pl.Buffered(1)))
        else:
            specs.append(pl.BlockSpec((ipp, opp), lambda i: (0, 0)))
            specs.append(pl.BlockSpec((1, opp), lambda i: (0, 0)))
    return specs


# ---------------------------------------------------------------------------
# Wrapper: single fused pallas_call over a (parallel) batch grid
# ---------------------------------------------------------------------------
def fcnet_h_class_forward(prepared, x, *, max_tile_n=1024,
                          vmem_budget_bytes=48 * 1024 * 1024):
    n, f = x.shape
    assert f == prepared["feature_channel"], "feature dim mismatch"
    dims = prepared["dims"]
    n_blocks = prepared["n_blocks"]
    out_channels = prepared["output_channel"]

    f_pad = dims[0][0]
    out_pad = dims[-1][1]

    tile_n = _pick_tile_n(n, f_pad, out_pad, dims, vmem_budget_bytes,
                          max_tile_n)
    n_pad = _round_up(n, tile_n)
    x_pad = jnp.pad(x.astype(jnp.float32), ((0, n_pad - n), (0, f_pad - f)))

    kernel = make_fused_fcnet_kernel(n_blocks, out_channels)
    compiler_params = pltpu.CompilerParams(
        dimension_semantics=("parallel",),
        vmem_limit_bytes=int(min(vmem_budget_bytes + (8 << 20), 64 << 20)))

    last_err = None
    for use_buffered in (True, False):   # fall back if Buffered(1) unsupported
        try:
            in_specs = _build_in_specs(tile_n, f_pad, dims, use_buffered)
            out = pl.pallas_call(
                kernel,
                out_shape=jax.ShapeDtypeStruct((n_pad, out_pad), jnp.float32),
                grid=(n_pad // tile_n,),
                in_specs=in_specs,
                out_specs=pl.BlockSpec((tile_n, out_pad), lambda i: (i, 0)),
                compiler_params=compiler_params,
            )(x_pad, *prepared["flat"])
            out = jax.block_until_ready(out)
            return out[:n, :out_channels]
        except Exception as e:  # noqa: BLE001 - retry without Buffered(1)
            last_err = e
    raise last_err


# ---------------------------------------------------------------------------
# Parameter construction (deterministic, PyTorch-like uniform init)
# ---------------------------------------------------------------------------
def _init_linear(key, in_features, out_features):
    kw, kb = jax.random.split(key)
    bound = 1.0 / jnp.sqrt(jnp.float32(in_features))
    # Stored as [in, out] (transposed vs. PyTorch) for y = x @ W + b.
    w = jax.random.uniform(kw, (in_features, out_features), jnp.float32,
                           minval=-bound, maxval=bound)
    b = jax.random.uniform(kb, (1, out_features), jnp.float32,
                           minval=-bound, maxval=bound)
    return w, b


def init_fcnet_params(key, feature_channel, output_channel, hidden_list):
    params = {"blocks": [], "last": None, "tissue_emb": None, "sex_emb": None}
    sizes = [feature_channel] + list(hidden_list)
    keys = jax.random.split(key, len(sizes) + 3)
    for i in range(len(sizes) - 1):
        params["blocks"].append(_init_linear(keys[i], sizes[i], sizes[i + 1]))
    params["last"] = _init_linear(keys[len(sizes) - 1], hidden_list[-1],
                                  output_channel)
    # Embeddings exist in __init__ but are unused by forward (parameter parity
    # only; never passed to the kernel).
    params["tissue_emb"] = jax.random.normal(keys[-2], (32, 32), jnp.float32)
    params["sex_emb"] = jax.random.normal(keys[-1], (4, 32), jnp.float32)
    return params


# ---------------------------------------------------------------------------
# Pure-JAX references for sanity checks
# ---------------------------------------------------------------------------
def fcnet_ref(params, x, mxu_dtype=jnp.float32):
    def mm(a, w):
        return jnp.dot(a.astype(mxu_dtype), w.astype(mxu_dtype),
                       preferred_element_type=jnp.float32)
    for w, b in params["blocks"]:
        x = jnp.maximum(mm(x, w) + b, 0.0)
    w, b = params["last"]
    y = mm(x, w) + b
    return jax.nn.log_softmax(y, axis=1)


if __name__ == "__main__":
    key = jax.random.PRNGKey(0)
    kparams, kx = jax.random.split(key)

    feature_channel = 32
    output_channel = 16
    hidden_list = [64, 48]
    batch = 8

    params = init_fcnet_params(kparams, feature_channel, output_channel,
                               hidden_list)
    prepared = prepare_fcnet_params(params)   # one-time pad + bf16 cast
    x = jax.random.normal(kx, (batch, feature_channel), jnp.float32)

    out = fcnet_h_class_forward(prepared, x)
    out = jax.block_until_ready(out)

    assert out.shape == (batch, output_channel)
    # Exact-semantics check (bf16 MXU operands, f32 accumulation) ...
    ref_bf16 = fcnet_ref(params, x, mxu_dtype=jnp.bfloat16)
    assert jnp.allclose(out, ref_bf16, atol=1e-4, rtol=1e-4), \
        "mismatch vs bf16-operand reference"
    # ... and a loose sanity check against the pure-f32 reference.
    ref_f32 = fcnet_ref(params, x, mxu_dtype=jnp.float32)
    assert jnp.allclose(out, ref_f32, atol=5e-2, rtol=5e-2), \
        "mismatch vs f32 reference"

    print("KERNEL_OK")
</pallas_src>

<mosaic_0001>
module attributes {stable_mosaic.version = 11 : i64} {
  func.func @kernel(%arg0: i32, %arg1: memref<8x128xf32, #tpu.memory_space<vmem>>, %arg2: memref<128x128xbf16, #tpu.memory_space<vmem>>, %arg3: memref<1x128xf32, #tpu.memory_space<vmem>>, %arg4: memref<128x128xbf16, #tpu.memory_space<vmem>>, %arg5: memref<1x128xf32, #tpu.memory_space<vmem>>, %arg6: memref<128x128xbf16, #tpu.memory_space<vmem>>, %arg7: memref<1x128xf32, #tpu.memory_space<vmem>>, %arg8: memref<8x128xf32, #tpu.memory_space<vmem>>) attributes {dimension_semantics = [#tpu.dimension_semantics<parallel>], iteration_bounds = array<i64: 1>, scalar_prefetch = 0 : i64, scratch_operands = 0 : i64, tpu.core_type = #tpu.core_type<tc>, window_params = [{transform_indices = @transform_0, window_bounds = array<i64: 8, 128>}, {pipeline_mode = #tpu.pipeline_mode<synchronous>, transform_indices = @transform_1, window_bounds = array<i64: 128, 128>}, {pipeline_mode = #tpu.pipeline_mode<synchronous>, transform_indices = @transform_2, window_bounds = array<i64: 1, 128>}, {pipeline_mode = #tpu.pipeline_mode<synchronous>, transform_indices = @transform_3, window_bounds = array<i64: 128, 128>}, {pipeline_mode = #tpu.pipeline_mode<synchronous>, transform_indices = @transform_4, window_bounds = array<i64: 1, 128>}, {pipeline_mode = #tpu.pipeline_mode<synchronous>, transform_indices = @transform_5, window_bounds = array<i64: 128, 128>}, {pipeline_mode = #tpu.pipeline_mode<synchronous>, transform_indices = @transform_6, window_bounds = array<i64: 1, 128>}, {transform_indices = @transform_7, window_bounds = array<i64: 8, 128>}]} {
    %c0 = arith.constant 0 : index
    %c0_0 = arith.constant 0 : index
    %0 = vector.load %arg1[%c0, %c0_0] : memref<8x128xf32, #tpu.memory_space<vmem>>, vector<8x128xf32>
    %c0_1 = arith.constant 0 : index
    %c0_2 = arith.constant 0 : index
    %1 = vector.load %arg2[%c0_1, %c0_2] : memref<128x128xbf16, #tpu.memory_space<vmem>>, vector<128x128xbf16>
    %c0_3 = arith.constant 0 : index
    %c0_4 = arith.constant 0 : index
    %2 = vector.load %arg3[%c0_3, %c0_4] : memref<1x128xf32, #tpu.memory_space<vmem>>, vector<1x128xf32>
    %3 = arith.truncf %0 : vector<8x128xf32> to vector<8x128xbf16>
    %cst = arith.constant dense<0.000000e+00> : vector<8x128xf32>
    %4 = tpu.matmul %3, %1, %cst {dimension_numbers = #tpu.dot_dimension_numbers<[1], [0], [0], [1], [0, 0, 1, 1], [], []>} : vector<8x128xbf16>, vector<128x128xbf16>, vector<8x128xf32> -> vector<8x128xf32>
    %5 = vector.broadcast %2 : vector<1x128xf32> to vector<8x128xf32>
    %6 = arith.addf %4, %5 : vector<8x128xf32>
    %cst_5 = arith.constant 0.000000e+00 : f32
    %7 = vector.broadcast %cst_5 : f32 to vector<8x128xf32>
    %8 = arith.maximumf %6, %7 : vector<8x128xf32>
    %c0_6 = arith.constant 0 : index
    %c0_7 = arith.constant 0 : index
    %9 = vector.load %arg4[%c0_6, %c0_7] : memref<128x128xbf16, #tpu.memory_space<vmem>>, vector<128x128xbf16>
    %c0_8 = arith.constant 0 : index
    %c0_9 = arith.constant 0 : index
    %10 = vector.load %arg5[%c0_8, %c0_9] : memref<1x128xf32, #tpu.memory_space<vmem>>, vector<1x128xf32>
    %11 = arith.truncf %8 : vector<8x128xf32> to vector<8x128xbf16>
    %cst_10 = arith.constant dense<0.000000e+00> : vector<8x128xf32>
    %12 = tpu.matmul %11, %9, %cst_10 {dimension_numbers = #tpu.dot_dimension_numbers<[1], [0], [0], [1], [0, 0, 1, 1], [], []>} : vector<8x128xbf16>, vector<128x128xbf16>, vector<8x128xf32> -> vector<8x128xf32>
    %13 = vector.broadcast %10 : vector<1x128xf32> to vector<8x128xf32>
    %14 = arith.addf %12, %13 : vector<8x128xf32>
    %cst_11 = arith.constant 0.000000e+00 : f32
    %15 = vector.broadcast %cst_11 : f32 to vector<8x128xf32>
    %16 = arith.maximumf %14, %15 : vector<8x128xf32>
    %c0_12 = arith.constant 0 : index
    %c0_13 = arith.constant 0 : index
    %17 = vector.load %arg6[%c0_12, %c0_13] : memref<128x128xbf16, #tpu.memory_space<vmem>>, vector<128x128xbf16>
    %c0_14 = arith.constant 0 : index
    %c0_15 = arith.constant 0 : index
    %18 = vector.load %arg7[%c0_14, %c0_15] : memref<1x128xf32, #tpu.memory_space<vmem>>, vector<1x128xf32>
    %19 = arith.truncf %16 : vector<8x128xf32> to vector<8x128xbf16>
    %cst_16 = arith.constant dense<0.000000e+00> : vector<8x128xf32>
    %20 = tpu.matmul %19, %17, %cst_16 {dimension_numbers = #tpu.dot_dimension_numbers<[1], [0], [0], [1], [0, 0, 1, 1], [], []>} : vector<8x128xbf16>, vector<128x128xbf16>, vector<8x128xf32> -> vector<8x128xf32>
    %21 = vector.broadcast %18 : vector<1x128xf32> to vector<8x128xf32>
    %22 = arith.addf %20, %21 : vector<8x128xf32>
    %23 = tpu.iota {dimensions = array<i32: 1>} : vector<8x128xi32>
    %c16_i32 = arith.constant 16 : i32
    %24 = vector.broadcast %c16_i32 : i32 to vector<8x128xi32>
    %25 = arith.cmpi slt, %23, %24 : vector<8x128xi32>
    %cst_17 = arith.constant -1.000000e+30 : f32
    %26 = vector.broadcast %cst_17 : f32 to vector<8x128xf32>
    %27 = arith.select %25, %22, %26 : vector<8x128xi1>, vector<8x128xf32>
    %cst_18 = arith.constant dense<0xFF800000> : vector<8xf32>
    %28 = vector.multi_reduction <maximumf>, %27, %cst_18 [1] : vector<8x128xf32> to vector<8xf32>
    %29 = vector.shape_cast %28 : vector<8xf32> to vector<8x1xf32>
    %30 = vector.broadcast %29 : vector<8x1xf32> to vector<8x128xf32>
    %31 = arith.subf %27, %30 : vector<8x128xf32>
    %32 = math.exp %31 : vector<8x128xf32>
    %cst_19 = arith.constant dense<0.000000e+00> : vector<8xf32>
    %33 = vector.multi_reduction <add>, %32, %cst_19 [1] : vector<8x128xf32> to vector<8xf32>
    %34 = vector.shape_cast %33 : vector<8xf32> to vector<8x1xf32>
    %35 = math.log %34 : vector<8x1xf32>
    %36 = vector.broadcast %35 : vector<8x1xf32> to vector<8x128xf32>
    %37 = arith.subf %31, %36 : vector<8x128xf32>
    %c0_20 = arith.constant 0 : index
    %c0_21 = arith.constant 0 : index
    %38 = vector.load %arg8[%c0_20, %c0_21] : memref<8x128xf32, #tpu.memory_space<vmem>>, vector<8x128xf32>
    tpu.vector_store %arg8[%c0_20, %c0_21], %37 {strides = array<i32>} : memref<8x128xf32, #tpu.memory_space<vmem>>, vector<8x128xf32>,
    return
  }
  func.func @transform_0(%arg0: i32) -> (i32, i32) {
    %c0_i32 = arith.constant 0 : i32
    %c0_i32_0 = arith.constant 0 : i32
    return %arg0, %c0_i32 : i32, i32
  }
  func.func @transform_1(%arg0: i32) -> (i32, i32) {
    %c0_i32 = arith.constant 0 : i32
    %c0_i32_0 = arith.constant 0 : i32
    %c0_i32_1 = arith.constant 0 : i32
    return %c0_i32, %c0_i32_0 : i32, i32
  }
  func.func @transform_2(%arg0: i32) -> (i32, i32) {
    %c0_i32 = arith.constant 0 : i32
    %c0_i32_0 = arith.constant 0 : i32
    %c0_i32_1 = arith.constant 0 : i32
    return %c0_i32, %c0_i32_0 : i32, i32
  }
  func.func @transform_3(%arg0: i32) -> (i32, i32) {
    %c0_i32 = arith.constant 0 : i32
    %c0_i32_0 = arith.constant 0 : i32
    %c0_i32_1 = arith.constant 0 : i32
    return %c0_i32, %c0_i32_0 : i32, i32
  }
  func.func @transform_4(%arg0: i32) -> (i32, i32) {
    %c0_i32 = arith.constant 0 : i32
    %c0_i32_0 = arith.constant 0 : i32
    %c0_i32_1 = arith.constant 0 : i32
    return %c0_i32, %c0_i32_0 : i32, i32
  }
  func.func @transform_5(%arg0: i32) -> (i32, i32) {
    %c0_i32 = arith.constant 0 : i32
    %c0_i32_0 = arith.constant 0 : i32
    %c0_i32_1 = arith.constant 0 : i32
    return %c0_i32, %c0_i32_0 : i32, i32
  }
  func.func @transform_6(%arg0: i32) -> (i32, i32) {
    %c0_i32 = arith.constant 0 : i32
    %c0_i32_0 = arith.constant 0 : i32
    %c0_i32_1 = arith.constant 0 : i32
    return %c0_i32, %c0_i32_0 : i32, i32
  }
  func.func @transform_7(%arg0: i32) -> (i32, i32) {
    %c0_i32 = arith.constant 0 : i32
    %c0_i32_0 = arith.constant 0 : i32
    return %arg0, %c0_i32 : i32, i32
  }
}

module attributes {stable_mosaic.version = 11 : i64} {
  func.func @kernel(%arg0: i32, %arg1: memref<8x128xf32, #tpu.memory_space<vmem>>, %arg2: memref<128x128xbf16, #tpu.memory_space<vmem>>, %arg3: memref<1x128xf32, #tpu.memory_space<vmem>>, %arg4: memref<128x128xbf16, #tpu.memory_space<vmem>>, %arg5: memref<1x128xf32, #tpu.memory_space<vmem>>, %arg6: memref<128x128xbf16, #tpu.memory_space<vmem>>, %arg7: memref<1x128xf32, #tpu.memory_space<vmem>>, %arg8: memref<8x128xf32, #tpu.memory_space<vmem>>) attributes {dimension_semantics = [#tpu.dimension_semantics<parallel>], iteration_bounds = array<i64: 1>, scalar_prefetch = 0 : i64, scratch_operands = 0 : i64, tpu.core_type = #tpu.core_type<tc>, window_params = [{transform_indices = @transform_0, window_bounds = array<i64: 8, 128>}, {pipeline_mode = #tpu.pipeline_mode<synchronous>, transform_indices = @transform_1, window_bounds = array<i64: 128, 128>}, {pipeline_mode = #tpu.pipeline_mode<synchronous>, transform_indices = @transform_2, window_bounds = array<i64: 1, 128>}, {pipeline_mode = #tpu.pipeline_mode<synchronous>, transform_indices = @transform_3, window_bounds = array<i64: 128, 128>}, {pipeline_mode = #tpu.pipeline_mode<synchronous>, transform_indices = @transform_4, window_bounds = array<i64: 1, 128>}, {pipeline_mode = #tpu.pipeline_mode<synchronous>, transform_indices = @transform_5, window_bounds = array<i64: 128, 128>}, {pipeline_mode = #tpu.pipeline_mode<synchronous>, transform_indices = @transform_6, window_bounds = array<i64: 1, 128>}, {transform_indices = @transform_7, window_bounds = array<i64: 8, 128>}]} {
    %c0 = arith.constant 0 : index
    %c0_0 = arith.constant 0 : index
    %0 = vector.load %arg1[%c0, %c0_0] : memref<8x128xf32, #tpu.memory_space<vmem>>, vector<8x128xf32>
    %c0_1 = arith.constant 0 : index
    %c0_2 = arith.constant 0 : index
    %1 = vector.load %arg2[%c0_1, %c0_2] : memref<128x128xbf16, #tpu.memory_space<vmem>>, vector<128x128xbf16>
    %c0_3 = arith.constant 0 : index
    %c0_4 = arith.constant 0 : index
    %2 = vector.load %arg3[%c0_3, %c0_4] : memref<1x128xf32, #tpu.memory_space<vmem>>, vector<1x128xf32>
    %3 = arith.truncf %0 : vector<8x128xf32> to vector<8x128xbf16>
    %cst = arith.constant dense<0.000000e+00> : vector<8x128xf32>
    %4 = tpu.matmul %3, %1, %cst {dimension_numbers = #tpu.dot_dimension_numbers<[1], [0], [0], [1], [0, 0, 1, 1], [], []>} : vector<8x128xbf16>, vector<128x128xbf16>, vector<8x128xf32> -> vector<8x128xf32>
    %5 = vector.broadcast %2 : vector<1x128xf32> to vector<8x128xf32>
    %6 = arith.addf %4, %5 : vector<8x128xf32>
    %cst_5 = arith.constant 0.000000e+00 : f32
    %7 = vector.broadcast %cst_5 : f32 to vector<8x128xf32>
    %8 = arith.maximumf %6, %7 : vector<8x128xf32>
    %c0_6 = arith.constant 0 : index
    %c0_7 = arith.constant 0 : index
    %9 = vector.load %arg4[%c0_6, %c0_7] : memref<128x128xbf16, #tpu.memory_space<vmem>>, vector<128x128xbf16>
    %c0_8 = arith.constant 0 : index
    %c0_9 = arith.constant 0 : index
    %10 = vector.load %arg5[%c0_8, %c0_9] : memref<1x128xf32, #tpu.memory_space<vmem>>, vector<1x128xf32>
    %11 = arith.truncf %8 : vector<8x128xf32> to vector<8x128xbf16>
    %cst_10 = arith.constant dense<0.000000e+00> : vector<8x128xf32>
    %12 = tpu.matmul %11, %9, %cst_10 {dimension_numbers = #tpu.dot_dimension_numbers<[1], [0], [0], [1], [0, 0, 1, 1], [], []>} : vector<8x128xbf16>, vector<128x128xbf16>, vector<8x128xf32> -> vector<8x128xf32>
    %13 = vector.broadcast %10 : vector<1x128xf32> to vector<8x128xf32>
    %14 = arith.addf %12, %13 : vector<8x128xf32>
    %cst_11 = arith.constant 0.000000e+00 : f32
    %15 = vector.broadcast %cst_11 : f32 to vector<8x128xf32>
    %16 = arith.maximumf %14, %15 : vector<8x128xf32>
    %c0_12 = arith.constant 0 : index
    %c0_13 = arith.constant 0 : index
    %17 = vector.load %arg6[%c0_12, %c0_13] : memref<128x128xbf16, #tpu.memory_space<vmem>>, vector<128x128xbf16>
    %c0_14 = arith.constant 0 : index
    %c0_15 = arith.constant 0 : index
    %18 = vector.load %arg7[%c0_14, %c0_15] : memref<1x128xf32, #tpu.memory_space<vmem>>, vector<1x128xf32>
    %19 = arith.truncf %16 : vector<8x128xf32> to vector<8x128xbf16>
    %cst_16 = arith.constant dense<0.000000e+00> : vector<8x128xf32>
    %20 = tpu.matmul %19, %17, %cst_16 {dimension_numbers = #tpu.dot_dimension_numbers<[1], [0], [0], [1], [0, 0, 1, 1], [], []>} : vector<8x128xbf16>, vector<128x128xbf16>, vector<8x128xf32> -> vector<8x128xf32>
    %21 = vector.broadcast %18 : vector<1x128xf32> to vector<8x128xf32>
    %22 = arith.addf %20, %21 : vector<8x128xf32>
    %23 = tpu.iota {dimensions = array<i32: 1>} : vector<8x128xi32>
    %c16_i32 = arith.constant 16 : i32
    %24 = vector.broadcast %c16_i32 : i32 to vector<8x128xi32>
    %25 = arith.cmpi slt, %23, %24 : vector<8x128xi32>
    %cst_17 = arith.constant -1.000000e+30 : f32
    %26 = vector.broadcast %cst_17 : f32 to vector<8x128xf32>
    %27 = arith.select %25, %22, %26 : vector<8x128xi1>, vector<8x128xf32>
    %cst_18 = arith.constant dense<0xFF800000> : vector<8xf32>
    %28 = vector.multi_reduction <maximumf>, %27, %cst_18 [1] : vector<8x128xf32> to vector<8xf32>
    %29 = vector.shape_cast %28 : vector<8xf32> to vector<8x1xf32>
    %30 = vector.broadcast %29 : vector<8x1xf32> to vector<8x128xf32>
    %31 = arith.subf %27, %30 : vector<8x128xf32>
    %32 = math.exp %31 : vector<8x128xf32>
    %cst_19 = arith.constant dense<0.000000e+00> : vector<8xf32>
    %33 = vector.multi_reduction <add>, %32, %cst_19 [1] : vector<8x128xf32> to vector<8xf32>
    %34 = vector.shape_cast %33 : vector<8xf32> to vector<8x1xf32>
    %35 = math.log %34 : vector<8x1xf32>
    %36 = vector.broadcast %35 : vector<8x1xf32> to vector<8x128xf32>
    %37 = arith.subf %31, %36 : vector<8x128xf32>
    %c0_20 = arith.constant 0 : index
    %c0_21 = arith.constant 0 : index
    %38 = vector.load %arg8[%c0_20, %c0_21] : memref<8x128xf32, #tpu.memory_space<vmem>>, vector<8x128xf32>
    tpu.vector_store %arg8[%c0_20, %c0_21], %37 {strides = array<i32>} : memref<8x128xf32, #tpu.memory_space<vmem>>, vector<8x128xf32>,
    return
  }
  func.func @transform_0(%arg0: i32) -> (i32, i32) {
    %c0_i32 = arith.constant 0 : i32
    %c0_i32_0 = arith.constant 0 : i32
    return %arg0, %c0_i32 : i32, i32
  }
  func.func @transform_1(%arg0: i32) -> (i32, i32) {
    %c0_i32 = arith.constant 0 : i32
    %c0_i32_0 = arith.constant 0 : i32
    %c0_i32_1 = arith.constant 0 : i32
    return %c0_i32, %c0_i32_0 : i32, i32
  }
  func.func @transform_2(%arg0: i32) -> (i32, i32) {
    %c0_i32 = arith.constant 0 : i32
    %c0_i32_0 = arith.constant 0 : i32
    %c0_i32_1 = arith.constant 0 : i32
    return %c0_i32, %c0_i32_0 : i32, i32
  }
  func.func @transform_3(%arg0: i32) -> (i32, i32) {
    %c0_i32 = arith.constant 0 : i32
    %c0_i32_0 = arith.constant 0 : i32
    %c0_i32_1 = arith.constant 0 : i32
    return %c0_i32, %c0_i32_0 : i32, i32
  }
  func.func @transform_4(%arg0: i32) -> (i32, i32) {
    %c0_i32 = arith.constant 0 : i32
    %c0_i32_0 = arith.constant 0 : i32
    %c0_i32_1 = arith.constant 0 : i32
    return %c0_i32, %c0_i32_0 : i32, i32
  }
  func.func @transform_5(%arg0: i32) -> (i32, i32) {
    %c0_i32 = arith.constant 0 : i32
    %c0_i32_0 = arith.constant 0 : i32
    %c0_i32_1 = arith.constant 0 : i32
    return %c0_i32, %c0_i32_0 : i32, i32
  }
  func.func @transform_6(%arg0: i32) -> (i32, i32) {
    %c0_i32 = arith.constant 0 : i32
    %c0_i32_0 = arith.constant 0 : i32
    %c0_i32_1 = arith.constant 0 : i32
    return %c0_i32, %c0_i32_0 : i32, i32
  }
  func.func @transform_7(%arg0: i32) -> (i32, i32) {
    %c0_i32 = arith.constant 0 : i32
    %c0_i32_0 = arith.constant 0 : i32
    return %arg0, %c0_i32 : i32, i32
  }
}

</mosaic_0001>

<bundles_post_ra>
// kernel: tpu_custom_call.1
= control target key start
LH: loop header
LB: loop body
LE: loop exit
PB: predicated region body
PF: predicated region fallthrough
CT: control target
= control target key end

     0   :  { %12 = vsyncpa [#allocation3], 0  ;;  %s823_s0 = inlined_call_operand.hbm [shape: f32[8,128], index: 0, kind: input, shape index: {}]   ;;  %s824_s1 = inlined_call_operand.hbm [shape: bf16[128,128], index: 1, kind: input, shape index: {}]   ;;  %s825_s2 = inlined_call_operand.vmem [shape: f32[1,128], index: 2, kind: input, shape index: {}]   ;;  %s826_s3 = inlined_call_operand.hbm [shape: bf16[128,128], index: 3, kind: input, shape index: {}]   ;;  %s827_s4 = inlined_call_operand.vmem [shape: f32[1,128], index: 4, kind: input, shape index: {}]   ;;  %s828_s5 = inlined_call_operand.hbm [shape: bf16[128,128], index: 5, kind: input, shape index: {}]   ;;  %s829_s6 = inlined_call_operand.vmem [shape: f32[1,128], index: 6, kind: input, shape index: {}]   ;;  %s830_s7 = inlined_call_operand.hbm [shape: f32[8,128], index: 7, kind: output, shape index: {}]  }
   0x1   :  { %13 = vsyncpa [#allocation6], 0 }
   0x2   :  { %14 = vsyncpa [#allocation9], 0 }
   0x3   :  { %15 = vsyncpa [#allocation4], 0  ;;  %s711_s24 = smov [#allocation5]  }
   0x4   :  { %s31_s25 = sshll.u32 %s711_s24, 4  ;;  %s32_s25 = int_to_ptr.vmem [resolvable:$true] %s31_s25 }
   0x5   :  { %s611_s26 = scalar_lea.vmem %s32_s25, 1024  ;;  %p616_p1 = scmp.lt.s32.totalorder %s32_s25, %s32_s25 }
   0x6   :  { %p612_p0 = scmp.ne.s32.totalorder %s32_s25, %s611_s26  ;;  %p617_p2 = scmp.lt.s32.totalorder %s611_s26, %s611_s26 }
   0x8   :  { %p618_p3 = por %p617_p2, %p616_p1 }
   0xa   :  { %p619_p4 = pnand %p618_p3, %p612_p0 }
   0xc   :  { %622 = shalt.err (!%p619_p4)
}
   0xd   :  { %s712_s27 = smov 64   ;;  %s713_s28 = smov 4  }
   0xe   :  { %37 = dma.hbm_to_vmem [thread:$0]  %s824_s1, 1024, %s32_s25, [#allocation6], %s712_s27, %s712_s27, %s713_s28  }
   0xf   :  { %s714_s8 = smov [#allocation2]   ;;  %s715_s10 = smov [#allocation7]  }
  0x10   :  { %s22_s9 = sshll.u32 %s714_s8, 4  ;;  %s45_s11 = sshll.u32 %s715_s10, 4  ;;  %s23_s9 = int_to_ptr.vmem [resolvable:$true] %s22_s9  ;;  %s46_s11 = int_to_ptr.vmem [resolvable:$true] %s45_s11 }
  0x11   :  { %s631_s12 = scalar_lea.vmem %s23_s9, 128  ;;  %p636_p6 = scmp.lt.s32.totalorder %s23_s9, %s23_s9 }
  0x12   :  { %p632_p5 = scmp.ne.s32.totalorder %s23_s9, %s631_s12  ;;  %p637_p7 = scmp.lt.s32.totalorder %s631_s12, %s631_s12 }
  0x14   :  { %p638_p8 = por %p637_p7, %p636_p6 }
  0x16   :  { %p639_p9 = pnand %p638_p8, %p632_p5 }
  0x18   :  { %642 = shalt.err (!%p639_p9)
}
  0x19   :  { %25 = dma.hbm_to_vmem [thread:$0]  %s823_s0, 128, %s23_s9, [#allocation3]  }
  0x1a   :  { %s651_s15 = scalar_lea.vmem %s46_s11, 1024  ;;  %p656_p11 = scmp.lt.s32.totalorder %s46_s11, %s46_s11 }
  0x1b   :  { %p652_p10 = scmp.ne.s32.totalorder %s46_s11, %s651_s15  ;;  %p657_p12 = scmp.lt.s32.totalorder %s651_s15, %s651_s15 }
  0x1d   :  { %p658_p13 = por %p657_p12, %p656_p11 }
  0x1f   :  { %p659_p0 = pnand %p658_p13, %p652_p10 }
  0x21   :  { %662 = shalt.err (!%p659_p0)
}
  0x22   :  { %51 = dma.hbm_to_vmem [thread:$0]  %s826_s3, 1024, %s46_s11, [#allocation6], %s712_s27, %s712_s27, %s713_s28  }
  0x23   :  { %s716_s17 = smov [#allocation8]  }
  0x24   :  { %s59_s18 = sshll.u32 %s716_s17, 4  ;;  %s60_s18 = int_to_ptr.vmem [resolvable:$true] %s59_s18 }
  0x25   :  { %s671_s19 = scalar_lea.vmem %s60_s18, 1024  ;;  %p676_p2 = scmp.lt.s32.totalorder %s60_s18, %s60_s18 }
  0x26   :  { %p672_p1 = scmp.ne.s32.totalorder %s60_s18, %s671_s19  ;;  %p677_p3 = scmp.lt.s32.totalorder %s671_s19, %s671_s19 }
  0x28   :  { %p678_p4 = por %p677_p3, %p676_p2 }
  0x2a   :  { %p679_p5 = pnand %p678_p4, %p672_p1 }
  0x2c   :  { %682 = shalt.err (!%p679_p5)
}
  0x2d   :  { %65 = dma.hbm_to_vmem [thread:$0]  %s828_s5, 1024, %s60_s18, [#allocation9], %s712_s27, %s712_s27, %s713_s28  }
  0x2e   :  { %703 = dma.done.wait [#allocation3], 128  }
  0x2f   :  { %704 = vsyncadd [#allocation3], 4294967168 }
  0x30   :  { %705 = dma.done.wait [#allocation6], 2048  }
  0x31   :  { %706 = vsyncadd [#allocation6], 4294965248 }
  0x32   :  { %707 = dma.done.wait [#allocation9], 1024  }
  0x33   :  { %708 = vsyncadd [#allocation9], 4294966272  ;;  %v717_v0 = vmov 0.0   ;;  %vm718_vm0 = vmmov 0   ;;  %v575_v1 = vld [vmem:[#allocation5 + $0x38] sm:$0xff]   ;;  %v576_v2 = vld [vmem:[#allocation5 + $0x30] sm:$0xff]   ;;  %v420_v43 = vlaneseq }
  0x34   :  { %506 = vmatprep.subr.bf16.mxu0 %v717_v0  ;;  %522 = vmatprep.mubr.msk.bf16.mxu0 %vm718_vm0, %v717_v0  ;;  %v577_v3 = vld [vmem:[#allocation5 + $0x28] sm:$0xff]   ;;  %v583_v4 = vld [vmem:[#allocation7 + $0x38] sm:$0xff]   ;;  %v578_v5 = vld [vmem:[#allocation5 + $0x20] sm:$0xff]  }
  0x35   :  { %526 = vmatprep.subr.bf16.mxu1 %v717_v0  ;;  %542 = vmatprep.mubr.msk.bf16.mxu1 %vm718_vm0, %v717_v0  ;;  %v584_v6 = vld [vmem:[#allocation7 + $0x30] sm:$0xff]   ;;  %v579_v7 = vld [vmem:[#allocation5 + $0x18] sm:$0xff]   ;;  %v585_v8 = vld [vmem:[#allocation7 + $0x28] sm:$0xff]   ;;  %v421_v44 = vand.u32 127, %v420_v43 }
  0x36   :  { %507 = vmatpush3.bf16.msra.mxu0 %v575_v1  ;;  %527 = vmatpush3.bf16.msra.mxu1 %v583_v4  ;;  %v580_v9 = vld [vmem:[#allocation5 + $0x10] sm:$0xff]   ;;  %v586_v10 = vld [vmem:[#allocation7 + $0x20] sm:$0xff]   ;;  %v581_v11 = vld [vmem:[#allocation5 + $0x8] sm:$0xff]  }
  0x37   :  { %508 = vmatprep.subr.bf16.mxu0 %v717_v0  ;;  %528 = vmatprep.subr.bf16.mxu1 %v717_v0  ;;  %v587_v12 = vld [vmem:[#allocation7 + $0x18] sm:$0xff]   ;;  %v582_v13 = vld [vmem:[#allocation5] sm:$0xff]   ;;  %v588_v15 = vld [vmem:[#allocation7 + $0x10] sm:$0xff]   ;;  %vm422_vm1 = vcmp.lt.s32.totalorder %v421_v44, 16 }
  0x38   :  { %v81_v14 = vld [vmem:[#allocation2] sm:$0xff]  ;;  %v589_v17 = vld [vmem:[#allocation7 + $0x8] sm:$0xff]   ;;  %v590_v18 = vld [vmem:[#allocation7] sm:$0xff]  }
  0x39   :  { %v99_v16 = vpack.c.bf16 %v81_v14, %v81_v14  ;;  %v591_v19 = vld [vmem:[#allocation8 + $0x38] sm:$0xff]   ;;  %v592_v20 = vld [vmem:[#allocation8 + $0x30] sm:$0xff]   ;;  %v593_v21 = vld [vmem:[#allocation8 + $0x28] sm:$0xff]  }
  0x3a   :  { %509 = vmatpush3.bf16.msra.mxu0 %v576_v2  ;;  %529 = vmatpush3.bf16.msra.mxu1 %v584_v6  ;;  %v594_v22 = vld [vmem:[#allocation8 + $0x20] sm:$0xff]   ;;  %v595_v23 = vld [vmem:[#allocation8 + $0x18] sm:$0xff]   ;;  %v596_v24 = vld [vmem:[#allocation8 + $0x10] sm:$0xff]  }
  0x3b   :  { %510 = vmatprep.subr.bf16.mxu0 %v717_v0  ;;  %530 = vmatprep.subr.bf16.mxu1 %v717_v0  ;;  %v452_v25 = vld [vmem:[%s825_s2] ss:$0 sm:$0xff]  ;;  %v597_v33 = vld [vmem:[#allocation8 + $0x8] sm:$0xff]   ;;  %v598_v34 = vld [vmem:[#allocation8] sm:$0xff]  }
  0x3c   :  { %v461_v35 = vld [vmem:[%s827_s4] ss:$0 sm:$0xff]  ;;  %s719_s4 = smov [#allocation10]  }
  0x3d   :  { %v470_v45 = vld [vmem:[%s829_s6] ss:$0 sm:$0xff]  ;;  %s441_s24 = sshll.u32 %s719_s4, 4  ;;  %s442_s24 = int_to_ptr.vmem [resolvable:$true] %s441_s24 }
  0x3e   :  { %511 = vmatpush3.bf16.msra.mxu0 %v577_v3  ;;  %531 = vmatpush3.bf16.msra.mxu1 %v585_v8  ;;  %s683_s6 = scalar_lea.vmem %s442_s24, 128  ;;  %p688_p7 = scmp.lt.s32.totalorder %s442_s24, %s442_s24 }
  0x3f   :  { %512 = vmatprep.subr.bf16.mxu0 %v717_v0  ;;  %532 = vmatprep.subr.bf16.mxu1 %v717_v0  ;;  %p684_p6 = scmp.ne.s32.totalorder %s442_s24, %s683_s6  ;;  %p689_p8 = scmp.lt.s32.totalorder %s683_s6, %s683_s6 }
  0x41   :  { %p690_p9 = por %p689_p8, %p688_p7 }
  0x42   :  { %513 = vmatpush3.bf16.msra.mxu0 %v578_v5  ;;  %533 = vmatpush3.bf16.msra.mxu1 %v586_v10 }
  0x43   :  { %514 = vmatprep.subr.bf16.mxu0 %v717_v0  ;;  %534 = vmatprep.subr.bf16.mxu1 %v717_v0  ;;  %p691_p10 = pnand %p690_p9, %p684_p6 }
  0x46   :  { %515 = vmatpush3.bf16.msra.mxu0 %v579_v7  ;;  %535 = vmatpush3.bf16.msra.mxu1 %v587_v12 }
  0x47   :  { %516 = vmatprep.subr.bf16.mxu0 %v717_v0  ;;  %536 = vmatprep.subr.bf16.mxu1 %v717_v0 }
  0x4a   :  { %517 = vmatpush3.bf16.msra.mxu0 %v580_v9  ;;  %537 = vmatpush3.bf16.msra.mxu1 %v588_v15 }
  0x4b   :  { %518 = vmatprep.subr.bf16.mxu0 %v717_v0  ;;  %538 = vmatprep.subr.bf16.mxu1 %v717_v0 }
  0x4e   :  { %519 = vmatpush3.bf16.msra.mxu0 %v581_v11  ;;  %539 = vmatpush3.bf16.msra.mxu1 %v589_v17 }
  0x4f   :  { %520 = vmatprep.subr.bf16.mxu0 %v717_v0  ;;  %540 = vmatprep.subr.bf16.mxu1 %v717_v0 }
  0x52   :  { %521 = vmatpush3.bf16.msra.mxu0 %v582_v13  ;;  %541 = vmatpush3.bf16.msra.mxu1 %v590_v18 }
  0x53   :  { %546 = vmatprep.subr.bf16.mxu0 %v717_v0 }
  0x55   :  { %523 = vmatmul.mubr.bf16.vlgmr.msra.gmra.mxu0 %v99_v16 }
  0x56   :  { %562 = vmatprep.mubr.msk.bf16.mxu0 %vm718_vm0, %v717_v0  ;;  %547 = vmatpush3.bf16.msra.mxu0 %v591_v19 }
  0x57   :  { %548 = vmatprep.subr.bf16.mxu0 %v717_v0 }
  0x5a   :  { %549 = vmatpush3.bf16.msra.mxu0 %v592_v20 }
  0x5b   :  { %550 = vmatprep.subr.bf16.mxu0 %v717_v0 }
  0x5e   :  { %551 = vmatpush3.bf16.msra.mxu0 %v593_v21 }
  0x5f   :  { %552 = vmatprep.subr.bf16.mxu0 %v717_v0 }
  0x62   :  { %553 = vmatpush3.bf16.msra.mxu0 %v594_v22 }
  0x63   :  { %554 = vmatprep.subr.bf16.mxu0 %v717_v0 }
  0x66   :  { %555 = vmatpush3.bf16.msra.mxu0 %v595_v23 }
  0x67   :  { %556 = vmatprep.subr.bf16.mxu0 %v717_v0 }
  0x6a   :  { %557 = vmatpush3.bf16.msra.mxu0 %v596_v24 }
  0x6b   :  { %558 = vmatprep.subr.bf16.mxu0 %v717_v0 }
  0x6e   :  { %559 = vmatpush3.bf16.msra.mxu0 %v597_v33 }
  0x6f   :  { %560 = vmatprep.subr.bf16.mxu0 %v717_v0 }
  0x72   :  { %561 = vmatpush3.bf16.msra.mxu0 %v598_v34 }
 0x115   :  { %v188_v26 = vpop.f32.mrf.mxu0 }
 0x116   :  { %v189_v27 = vadd.f32 %v452_v25, %v188_v26 }
 0x117   :  { %v524_v28 = vpop.f32.mrf.mxu0 }
 0x118   :  { %v194_v29 = vmax.f32 %v189_v27, 0.0 }
 0x119   :  { %v191_v30 = vpop.f32.mrf.mxu0 }
 0x11a   :  { %v212_v31 = vpack.c.bf16 %v194_v29, %v194_v29 }
 0x11b   :  { %v525_v32 = vpop.f32.mrf.mxu0 }
 0x11c   :  { %543 = vmatmul.mubr.bf16.vlgmr.msra.gmra.mxu1 %v212_v31 }
 0x1dc   :  { %v301_v36 = vpop.f32.mrf.mxu1 }
 0x1dd   :  { %v302_v37 = vadd.f32 %v461_v35, %v301_v36 }
 0x1de   :  { %v544_v38 = vpop.f32.mrf.mxu1 }
 0x1df   :  { %v307_v39 = vmax.f32 %v302_v37, 0.0 }
 0x1e0   :  { %v304_v40 = vpop.f32.mrf.mxu1 }
 0x1e1   :  { %v325_v41 = vpack.c.bf16 %v307_v39, %v307_v39 }
 0x1e2   :  { %v545_v42 = vpop.f32.mrf.mxu1 }
 0x1e3   :  { %563 = vmatmul.mubr.bf16.vlgmr.msra.gmra.mxu0 %v325_v41 }
 0x2a3   :  { %v414_v46 = vpop.f32.mrf.mxu0 }
 0x2a4   :  { %v415_v47 = vadd.f32 %v470_v45, %v414_v46 }
 0x2a5   :  { %v564_v48 = vpop.f32.mrf.mxu0 }
 0x2a6   :  { %v423_v49 = vsel %vm422_vm1, %v415_v47, -1e+30 }
 0x2a7   :  { %424 = vmax.xlane.f32.xlu0 %v423_v49  ;;  %v417_v50 = vpop.f32.mrf.mxu0 }
 0x2a9   :  { %v565_v51 = vpop.f32.mrf.mxu0 }
 0x330   :  { %v425_v52 = vpop.xlane.xlu0 %424 }
 0x331   :  { %v426_v53 = vsub.f32 %v423_v49, %v425_v52 }
 0x333   :  { %v427_v54 = vmul.f32 1.442695, %v426_v53 }
 0x335   :  { %599 = vpow2.f32 %v427_v54 }
 0x342   :  { %v600_v55 = vpop.eup %599 }
 0x343   :  { %429 = vadd.xlane.f32.xlu0 %v600_v55 }
 0x3cc   :  { %v430_v56 = vpop.xlane.xlu0 %429 }
 0x3cd   :  { %601 = vlog2.f32 %v430_v56 }
 0x3da   :  { %v602_v57 = vpop.eup %601 }
 0x3db   :  { %v432_v58 = vmul.f32 0.6931472, %v602_v57 }
 0x3dd   :  { %v433_v59 = vsub.f32 %v426_v53, %v432_v58 }
 0x3df   :  { %434 = vst [vmem:[#allocation10] sm:$0xff] %v433_v59 }
 0x3e0   :  { %694 = shalt.err (!%p691_p10)
}
 0x3e1   :  { %444 = dma.vmem_to_hbm [thread:$0]  %s442_s24, 128, %s830_s7, [#allocation4]  }
 0x3e2   :  { %709 = dma.done.wait [#allocation4], 128  }
 0x3e3   :  { %710 = vsyncadd [#allocation4], 4294967168 }
 0x3e4   :  { %448 = vsyncpa [#allocation3], 1 }
 0x3e5   :  { %449 = vsyncpa [#allocation6], 1 }
 0x3e6   :  { %450 = vsyncpa [#allocation9], 1 }
 0x3e7   :  { %451 = vsyncpa [#allocation4], 1 }

// kernel: tpu_custom_call.1
= control target key start
LH: loop header
LB: loop body
LE: loop exit
PB: predicated region body
PF: predicated region fallthrough
CT: control target
= control target key end

     0   :  { %12 = vsyncpa [#allocation3], 0  ;;  %s823_s0 = inlined_call_operand.hbm [shape: f32[8,128], index: 0, kind: input, shape index: {}]   ;;  %s824_s1 = inlined_call_operand.hbm [shape: bf16[128,128], index: 1, kind: input, shape index: {}]   ;;  %s825_s2 = inlined_call_operand.vmem [shape: f32[1,128], index: 2, kind: input, shape index: {}]   ;;  %s826_s3 = inlined_call_operand.hbm [shape: bf16[128,128], index: 3, kind: input, shape index: {}]   ;;  %s827_s4 = inlined_call_operand.vmem [shape: f32[1,128], index: 4, kind: input, shape index: {}]   ;;  %s828_s5 = inlined_call_operand.hbm [shape: bf16[128,128], index: 5, kind: input, shape index: {}]   ;;  %s829_s6 = inlined_call_operand.vmem [shape: f32[1,128], index: 6, kind: input, shape index: {}]   ;;  %s830_s7 = inlined_call_operand.hbm [shape: f32[8,128], index: 7, kind: output, shape index: {}]  }
   0x1   :  { %13 = vsyncpa [#allocation6], 0 }
   0x2   :  { %14 = vsyncpa [#allocation9], 0 }
   0x3   :  { %15 = vsyncpa [#allocation4], 0  ;;  %s711_s24 = smov [#allocation5]  }
   0x4   :  { %s31_s25 = sshll.u32 %s711_s24, 4  ;;  %s32_s25 = int_to_ptr.vmem [resolvable:$true] %s31_s25 }
   0x5   :  { %s611_s26 = scalar_lea.vmem %s32_s25, 1024  ;;  %p616_p1 = scmp.lt.s32.totalorder %s32_s25, %s32_s25 }
   0x6   :  { %p612_p0 = scmp.ne.s32.totalorder %s32_s25, %s611_s26  ;;  %p617_p2 = scmp.lt.s32.totalorder %s611_s26, %s611_s26 }
   0x8   :  { %p618_p3 = por %p617_p2, %p616_p1 }
   0xa   :  { %p619_p4 = pnand %p618_p3, %p612_p0 }
   0xc   :  { %622 = shalt.err (!%p619_p4)
}
   0xd   :  { %s712_s27 = smov 64   ;;  %s713_s28 = smov 4  }
   0xe   :  { %37 = dma.hbm_to_vmem [thread:$0]  %s824_s1, 1024, %s32_s25, [#allocation6], %s712_s27, %s712_s27, %s713_s28  }
   0xf   :  { %s714_s8 = smov [#allocation2]   ;;  %s715_s10 = smov [#allocation7]  }
  0x10   :  { %s22_s9 = sshll.u32 %s714_s8, 4  ;;  %s45_s11 = sshll.u32 %s715_s10, 4  ;;  %s23_s9 = int_to_ptr.vmem [resolvable:$true] %s22_s9  ;;  %s46_s11 = int_to_ptr.vmem [resolvable:$true] %s45_s11 }
  0x11   :  { %s631_s12 = scalar_lea.vmem %s23_s9, 128  ;;  %p636_p6 = scmp.lt.s32.totalorder %s23_s9, %s23_s9 }
  0x12   :  { %p632_p5 = scmp.ne.s32.totalorder %s23_s9, %s631_s12  ;;  %p637_p7 = scmp.lt.s32.totalorder %s631_s12, %s631_s12 }
  0x14   :  { %p638_p8 = por %p637_p7, %p636_p6 }
  0x16   :  { %p639_p9 = pnand %p638_p8, %p632_p5 }
  0x18   :  { %642 = shalt.err (!%p639_p9)
}
  0x19   :  { %25 = dma.hbm_to_vmem [thread:$0]  %s823_s0, 128, %s23_s9, [#allocation3]  }
  0x1a   :  { %s651_s15 = scalar_lea.vmem %s46_s11, 1024  ;;  %p656_p11 = scmp.lt.s32.totalorder %s46_s11, %s46_s11 }
  0x1b   :  { %p652_p10 = scmp.ne.s32.totalorder %s46_s11, %s651_s15  ;;  %p657_p12 = scmp.lt.s32.totalorder %s651_s15, %s651_s15 }
  0x1d   :  { %p658_p13 = por %p657_p12, %p656_p11 }
  0x1f   :  { %p659_p0 = pnand %p658_p13, %p652_p10 }
  0x21   :  { %662 = shalt.err (!%p659_p0)
}
  0x22   :  { %51 = dma.hbm_to_vmem [thread:$0]  %s826_s3, 1024, %s46_s11, [#allocation6], %s712_s27, %s712_s27, %s713_s28  }
  0x23   :  { %s716_s17 = smov [#allocation8]  }
  0x24   :  { %s59_s18 = sshll.u32 %s716_s17, 4  ;;  %s60_s18 = int_to_ptr.vmem [resolvable:$true] %s59_s18 }
  0x25   :  { %s671_s19 = scalar_lea.vmem %s60_s18, 1024  ;;  %p676_p2 = scmp.lt.s32.totalorder %s60_s18, %s60_s18 }
  0x26   :  { %p672_p1 = scmp.ne.s32.totalorder %s60_s18, %s671_s19  ;;  %p677_p3 = scmp.lt.s32.totalorder %s671_s19, %s671_s19 }
  0x28   :  { %p678_p4 = por %p677_p3, %p676_p2 }
  0x2a   :  { %p679_p5 = pnand %p678_p4, %p672_p1 }
  0x2c   :  { %682 = shalt.err (!%p679_p5)
}
  0x2d   :  { %65 = dma.hbm_to_vmem [thread:$0]  %s828_s5, 1024, %s60_s18, [#allocation9], %s712_s27, %s712_s27, %s713_s28  }
  0x2e   :  { %703 = dma.done.wait [#allocation3], 128  }
  0x2f   :  { %704 = vsyncadd [#allocation3], 4294967168 }
  0x30   :  { %705 = dma.done.wait [#allocation6], 2048  }
  0x31   :  { %706 = vsyncadd [#allocation6], 4294965248 }
  0x32   :  { %707 = dma.done.wait [#allocation9], 1024  }
  0x33   :  { %708 = vsyncadd [#allocation9], 4294966272  ;;  %v717_v0 = vmov 0.0   ;;  %vm718_vm0 = vmmov 0   ;;  %v575_v1 = vld [vmem:[#allocation5 + $0x38] sm:$0xff]   ;;  %v576_v2 = vld [vmem:[#allocation5 + $0x30] sm:$0xff]   ;;  %v420_v43 = vlaneseq }
  0x34   :  { %506 = vmatprep.subr.bf16.mxu0 %v717_v0  ;;  %522 = vmatprep.mubr.msk.bf16.mxu0 %vm718_vm0, %v717_v0  ;;  %v577_v3 = vld [vmem:[#allocation5 + $0x28] sm:$0xff]   ;;  %v583_v4 = vld [vmem:[#allocation7 + $0x38] sm:$0xff]   ;;  %v578_v5 = vld [vmem:[#allocation5 + $0x20] sm:$0xff]  }
  0x35   :  { %526 = vmatprep.subr.bf16.mxu1 %v717_v0  ;;  %542 = vmatprep.mubr.msk.bf16.mxu1 %vm718_vm0, %v717_v0  ;;  %v584_v6 = vld [vmem:[#allocation7 + $0x30] sm:$0xff]   ;;  %v579_v7 = vld [vmem:[#allocation5 + $0x18] sm:$0xff]   ;;  %v585_v8 = vld [vmem:[#allocation7 + $0x28] sm:$0xff]   ;;  %v421_v44 = vand.u32 127, %v420_v43 }
  0x36   :  { %507 = vmatpush3.bf16.msra.mxu0 %v575_v1  ;;  %527 = vmatpush3.bf16.msra.mxu1 %v583_v4  ;;  %v580_v9 = vld [vmem:[#allocation5 + $0x10] sm:$0xff]   ;;  %v586_v10 = vld [vmem:[#allocation7 + $0x20] sm:$0xff]   ;;  %v581_v11 = vld [vmem:[#allocation5 + $0x8] sm:$0xff]  }
  0x37   :  { %508 = vmatprep.subr.bf16.mxu0 %v717_v0  ;;  %528 = vmatprep.subr.bf16.mxu1 %v717_v0  ;;  %v587_v12 = vld [vmem:[#allocation7 + $0x18] sm:$0xff]   ;;  %v582_v13 = vld [vmem:[#allocation5] sm:$0xff]   ;;  %v588_v15 = vld [vmem:[#allocation7 + $0x10] sm:$0xff]   ;;  %vm422_vm1 = vcmp.lt.s32.totalorder %v421_v44, 16 }
  0x38   :  { %v81_v14 = vld [vmem:[#allocation2] sm:$0xff]  ;;  %v589_v17 = vld [vmem:[#allocation7 + $0x8] sm:$0xff]   ;;  %v590_v18 = vld [vmem:[#allocation7] sm:$0xff]  }
  0x39   :  { %v99_v16 = vpack.c.bf16 %v81_v14, %v81_v14  ;;  %v591_v19 = vld [vmem:[#allocation8 + $0x38] sm:$0xff]   ;;  %v592_v20 = vld [vmem:[#allocation8 + $0x30] sm:$0xff]   ;;  %v593_v21 = vld [vmem:[#allocation8 + $0x28] sm:$0xff]  }
  0x3a   :  { %509 = vmatpush3.bf16.msra.mxu0 %v576_v2  ;;  %529 = vmatpush3.bf16.msra.mxu1 %v584_v6  ;;  %v594_v22 = vld [vmem:[#allocation8 + $0x20] sm:$0xff]   ;;  %v595_v23 = vld [vmem:[#allocation8 + $0x18] sm:$0xff]   ;;  %v596_v24 = vld [vmem:[#allocation8 + $0x10] sm:$0xff]  }
  0x3b   :  { %510 = vmatprep.subr.bf16.mxu0 %v717_v0  ;;  %530 = vmatprep.subr.bf16.mxu1 %v717_v0  ;;  %v452_v25 = vld [vmem:[%s825_s2] ss:$0 sm:$0xff]  ;;  %v597_v33 = vld [vmem:[#allocation8 + $0x8] sm:$0xff]   ;;  %v598_v34 = vld [vmem:[#allocation8] sm:$0xff]  }
  0x3c   :  { %v461_v35 = vld [vmem:[%s827_s4] ss:$0 sm:$0xff]  ;;  %s719_s4 = smov [#allocation10]  }
  0x3d   :  { %v470_v45 = vld [vmem:[%s829_s6] ss:$0 sm:$0xff]  ;;  %s441_s24 = sshll.u32 %s719_s4, 4  ;;  %s442_s24 = int_to_ptr.vmem [resolvable:$true] %s441_s24 }
  0x3e   :  { %511 = vmatpush3.bf16.msra.mxu0 %v577_v3  ;;  %531 = vmatpush3.bf16.msra.mxu1 %v585_v8  ;;  %s683_s6 = scalar_lea.vmem %s442_s24, 128  ;;  %p688_p7 = scmp.lt.s32.totalorder %s442_s24, %s442_s24 }
  0x3f   :  { %512 = vmatprep.subr.bf16.mxu0 %v717_v0  ;;  %532 = vmatprep.subr.bf16.mxu1 %v717_v0  ;;  %p684_p6 = scmp.ne.s32.totalorder %s442_s24, %s683_s6  ;;  %p689_p8 = scmp.lt.s32.totalorder %s683_s6, %s683_s6 }
  0x41   :  { %p690_p9 = por %p689_p8, %p688_p7 }
  0x42   :  { %513 = vmatpush3.bf16.msra.mxu0 %v578_v5  ;;  %533 = vmatpush3.bf16.msra.mxu1 %v586_v10 }
  0x43   :  { %514 = vmatprep.subr.bf16.mxu0 %v717_v0  ;;  %534 = vmatprep.subr.bf16.mxu1 %v717_v0  ;;  %p691_p10 = pnand %p690_p9, %p684_p6 }
  0x46   :  { %515 = vmatpush3.bf16.msra.mxu0 %v579_v7  ;;  %535 = vmatpush3.bf16.msra.mxu1 %v587_v12 }
  0x47   :  { %516 = vmatprep.subr.bf16.mxu0 %v717_v0  ;;  %536 = vmatprep.subr.bf16.mxu1 %v717_v0 }
  0x4a   :  { %517 = vmatpush3.bf16.msra.mxu0 %v580_v9  ;;  %537 = vmatpush3.bf16.msra.mxu1 %v588_v15 }
  0x4b   :  { %518 = vmatprep.subr.bf16.mxu0 %v717_v0  ;;  %538 = vmatprep.subr.bf16.mxu1 %v717_v0 }
  0x4e   :  { %519 = vmatpush3.bf16.msra.mxu0 %v581_v11  ;;  %539 = vmatpush3.bf16.msra.mxu1 %v589_v17 }
  0x4f   :  { %520 = vmatprep.subr.bf16.mxu0 %v717_v0  ;;  %540 = vmatprep.subr.bf16.mxu1 %v717_v0 }
  0x52   :  { %521 = vmatpush3.bf16.msra.mxu0 %v582_v13  ;;  %541 = vmatpush3.bf16.msra.mxu1 %v590_v18 }
  0x53   :  { %546 = vmatprep.subr.bf16.mxu0 %v717_v0 }
  0x55   :  { %523 = vmatmul.mubr.bf16.vlgmr.msra.gmra.mxu0 %v99_v16 }
  0x56   :  { %562 = vmatprep.mubr.msk.bf16.mxu0 %vm718_vm0, %v717_v0  ;;  %547 = vmatpush3.bf16.msra.mxu0 %v591_v19 }
  0x57   :  { %548 = vmatprep.subr.bf16.mxu0 %v717_v0 }
  0x5a   :  { %549 = vmatpush3.bf16.msra.mxu0 %v592_v20 }
  0x5b   :  { %550 = vmatprep.subr.bf16.mxu0 %v717_v0 }
  0x5e   :  { %551 = vmatpush3.bf16.msra.mxu0 %v593_v21 }
  0x5f   :  { %552 = vmatprep.subr.bf16.mxu0 %v717_v0 }
  0x62   :  { %553 = vmatpush3.bf16.msra.mxu0 %v594_v22 }
  0x63   :  { %554 = vmatprep.subr.bf16.mxu0 %v717_v0 }
  0x66   :  { %555 = vmatpush3.bf16.msra.mxu0 %v595_v23 }
  0x67   :  { %556 = vmatprep.subr.bf16.mxu0 %v717_v0 }
  0x6a   :  { %557 = vmatpush3.bf16.msra.mxu0 %v596_v24 }
  0x6b   :  { %558 = vmatprep.subr.bf16.mxu0 %v717_v0 }
  0x6e   :  { %559 = vmatpush3.bf16.msra.mxu0 %v597_v33 }
  0x6f   :  { %560 = vmatprep.subr.bf16.mxu0 %v717_v0 }
  0x72   :  { %561 = vmatpush3.bf16.msra.mxu0 %v598_v34 }
 0x115   :  { %v188_v26 = vpop.f32.mrf.mxu0 }
 0x116   :  { %v189_v27 = vadd.f32 %v452_v25, %v188_v26 }
 0x117   :  { %v524_v28 = vpop.f32.mrf.mxu0 }
 0x118   :  { %v194_v29 = vmax.f32 %v189_v27, 0.0 }
 0x119   :  { %v191_v30 = vpop.f32.mrf.mxu0 }
 0x11a   :  { %v212_v31 = vpack.c.bf16 %v194_v29, %v194_v29 }
 0x11b   :  { %v525_v32 = vpop.f32.mrf.mxu0 }
 0x11c   :  { %543 = vmatmul.mubr.bf16.vlgmr.msra.gmra.mxu1 %v212_v31 }
 0x1dc   :  { %v301_v36 = vpop.f32.mrf.mxu1 }
 0x1dd   :  { %v302_v37 = vadd.f32 %v461_v35, %v301_v36 }
 0x1de   :  { %v544_v38 = vpop.f32.mrf.mxu1 }
 0x1df   :  { %v307_v39 = vmax.f32 %v302_v37, 0.0 }
 0x1e0   :  { %v304_v40 = vpop.f32.mrf.mxu1 }
 0x1e1   :  { %v325_v41 = vpack.c.bf16 %v307_v39, %v307_v39 }
 0x1e2   :  { %v545_v42 = vpop.f32.mrf.mxu1 }
 0x1e3   :  { %563 = vmatmul.mubr.bf16.vlgmr.msra.gmra.mxu0 %v325_v41 }
 0x2a3   :  { %v414_v46 = vpop.f32.mrf.mxu0 }
 0x2a4   :  { %v415_v47 = vadd.f32 %v470_v45, %v414_v46 }
 0x2a5   :  { %v564_v48 = vpop.f32.mrf.mxu0 }
 0x2a6   :  { %v423_v49 = vsel %vm422_vm1, %v415_v47, -1e+30 }
 0x2a7   :  { %424 = vmax.xlane.f32.xlu0 %v423_v49  ;;  %v417_v50 = vpop.f32.mrf.mxu0 }
 0x2a9   :  { %v565_v51 = vpop.f32.mrf.mxu0 }
 0x330   :  { %v425_v52 = vpop.xlane.xlu0 %424 }
 0x331   :  { %v426_v53 = vsub.f32 %v423_v49, %v425_v52 }
 0x333   :  { %v427_v54 = vmul.f32 1.442695, %v426_v53 }
 0x335   :  { %599 = vpow2.f32 %v427_v54 }
 0x342   :  { %v600_v55 = vpop.eup %599 }
 0x343   :  { %429 = vadd.xlane.f32.xlu0 %v600_v55 }
 0x3cc   :  { %v430_v56 = vpop.xlane.xlu0 %429 }
 0x3cd   :  { %601 = vlog2.f32 %v430_v56 }
 0x3da   :  { %v602_v57 = vpop.eup %601 }
 0x3db   :  { %v432_v58 = vmul.f32 0.6931472, %v602_v57 }
 0x3dd   :  { %v433_v59 = vsub.f32 %v426_v53, %v432_v58 }
 0x3df   :  { %434 = vst [vmem:[#allocation10] sm:$0xff] %v433_v59 }
 0x3e0   :  { %694 = shalt.err (!%p691_p10)
}
 0x3e1   :  { %444 = dma.vmem_to_hbm [thread:$0]  %s442_s24, 128, %s830_s7, [#allocation4]  }
 0x3e2   :  { %709 = dma.done.wait [#allocation4], 128  }
 0x3e3   :  { %710 = vsyncadd [#allocation4], 4294967168 }
 0x3e4   :  { %448 = vsyncpa [#allocation3], 1 }
 0x3e5   :  { %449 = vsyncpa [#allocation6], 1 }
 0x3e6   :  { %450 = vsyncpa [#allocation9], 1 }
 0x3e7   :  { %451 = vsyncpa [#allocation4], 1 }

</bundles_post_ra>
